<compile_context>
chip_gen: v5e
topology: v5e:2x2
jax: 0.10.0
libtpu: 0.0.40
codegen_flags: <defaults>
</compile_context>

<pallas_src>
import math

import jax
import jax.numpy as jnp
from jax.experimental import pallas as pl
from jax.experimental.pallas import tpu as pltpu


EMBED_DIM = 32
NUM_HEADS = 2
BATCH = 2
SEQ_LEN = 8
NEG_INF = -1e20


# ----------------------------- kernel -----------------------------
def mha_kernel(v_ref, k_ref, q_ref, mask_ref,
               wv_ref, wk_ref, wq_ref, wo_ref, bo_ref,
               out_ref, attn_ref):
    # v/k/q_ref : (N, L, D)        mask_ref : (N, L)
    # wv/wk/wq_ref : (H, D, hs)    wo_ref : (H, hs, D)   bo_ref : (1, D)
    # out_ref : (N*L, D)           attn_ref : (H, N, L, L)
    N, L, D = q_ref.shape
    H = wq_ref.shape[0]
    hs = wq_ref.shape[2]
    inv_scale = 1.0 / math.sqrt(D)          # PyTorch scales by sqrt(embed_dim)

    q2 = q_ref[...].reshape(N * L, D)
    k2 = k_ref[...].reshape(N * L, D)
    v2 = v_ref[...].reshape(N * L, D)

    # additive key mask, (N, 1, L): 0 where attended, -1e20 where mask == 0
    bias = jnp.where(mask_ref[...] == 0.0, NEG_INF, 0.0)[:, None, :]

    o2 = jnp.zeros((N * L, D), jnp.float32)
    for h in range(H):                                        # static unroll, H = 2
        Qh = jnp.dot(q2, wq_ref[h], preferred_element_type=jnp.float32)   # (N*L, hs)
        Kh = jnp.dot(k2, wk_ref[h], preferred_element_type=jnp.float32)
        Vh = jnp.dot(v2, wv_ref[h], preferred_element_type=jnp.float32)
        Qh = Qh.reshape(N, L, hs)
        Kh = Kh.reshape(N, L, hs)
        Vh = Vh.reshape(N, L, hs)

        # batched scores over the batch axis: (N, L, L)
        e = jnp.einsum('nqd,nkd->nqk', Qh, Kh,
                       preferred_element_type=jnp.float32) * inv_scale + bias
        e = e - jnp.max(e, axis=-1, keepdims=True)
        p = jnp.exp(e)
        p = p * pl.reciprocal(jnp.sum(p, axis=-1, keepdims=True), approx=True)
        attn_ref[h] = p                                        # (N, L, L)

        # weighted sum and head contribution to the output projection
        oh = jnp.einsum('nqk,nkd->nqd', p, Vh,
                        preferred_element_type=jnp.float32)    # (N, L, hs)
        o2 = o2 + jnp.dot(oh.reshape(N * L, hs), wo_ref[h],
                          preferred_element_type=jnp.float32)  # (N*L, D)

    out_ref[...] = o2 + bo_ref[...]


# ----------------------------- wrapper -----------------------------
def mha_forward(values, keys, queries, mask, wv_t, wk_t, wq_t, wo_t, bo, num_heads):
    """values/keys/queries: (N, L, D); mask: (N, L); W*_t stored as (in, out)."""
    N, L, D = queries.shape
    hs = D // num_heads

    # pre-slice per-head weight panels (no lane slicing / concat inside the kernel)
    wq_s = jnp.stack([wq_t[:, h * hs:(h + 1) * hs] for h in range(num_heads)])  # (H, D, hs)
    wk_s = jnp.stack([wk_t[:, h * hs:(h + 1) * hs] for h in range(num_heads)])
    wv_s = jnp.stack([wv_t[:, h * hs:(h + 1) * hs] for h in range(num_heads)])
    wo_s = jnp.stack([wo_t[h * hs:(h + 1) * hs, :] for h in range(num_heads)])  # (H, hs, D)

    vmem = pl.BlockSpec(memory_space=pltpu.MemorySpace.VMEM)
    out2, attn_h = pl.pallas_call(
        mha_kernel,
        out_shape=(jax.ShapeDtypeStruct((N * L, D), jnp.float32),
                   jax.ShapeDtypeStruct((num_heads, N, L, L), jnp.float32)),
        in_specs=[vmem] * 9,
        out_specs=(vmem, vmem),
    )(values, keys, queries, mask, wv_s, wk_s, wq_s, wo_s, bo)

    out = out2.reshape(N, L, D)
    attention = jnp.transpose(attn_h, (1, 0, 2, 3))            # (N, H, L, L)
    return out, attention


# ----------------------------- pure-JAX reference (mirrors the PyTorch module) ----
def reference_mha(values, keys, queries, mask, wv_t, wk_t, wq_t, wo_t, bo, num_heads):
    N, L, D = queries.shape
    hs = D // num_heads
    V = (values @ wv_t).reshape(N, L, num_heads, hs)
    K = (keys @ wk_t).reshape(N, L, num_heads, hs)
    Q = (queries @ wq_t).reshape(N, L, num_heads, hs)
    energy = jnp.einsum('nqhd,nkhd->nhqk', Q, K)
    energy = jnp.where(mask[:, None, None, :] == 0.0, NEG_INF, energy)
    attention = jax.nn.softmax(energy / math.sqrt(D), axis=3)
    out = jnp.einsum('nhql,nlhd->nqhd', attention, V).reshape(N, L, D) @ wo_t + bo
    return out, attention


# ----------------------------- main -----------------------------
if __name__ == "__main__":
    key = jax.random.PRNGKey(0)
    kq, kk, kv, kwq, kwk, kwv, kwo, kbo = jax.random.split(key, 8)

    queries = jax.random.normal(kq, (BATCH, SEQ_LEN, EMBED_DIM), jnp.float32)
    keys = jax.random.normal(kk, (BATCH, SEQ_LEN, EMBED_DIM), jnp.float32)
    values = jax.random.normal(kv, (BATCH, SEQ_LEN, EMBED_DIM), jnp.float32)

    # attention mask (N, L): 1 = attend, 0 = masked. Mask out the last 3 keys of batch 1.
    mask = jnp.ones((BATCH, SEQ_LEN), jnp.float32)
    mask = mask.at[1, SEQ_LEN - 3:].set(0.0)

    # Linear weights stored pre-transposed as (in_features, out_features): y = x @ W (+ b)
    wq_t = jax.random.normal(kwq, (EMBED_DIM, EMBED_DIM), jnp.float32) * 0.1
    wk_t = jax.random.normal(kwk, (EMBED_DIM, EMBED_DIM), jnp.float32) * 0.1
    wv_t = jax.random.normal(kwv, (EMBED_DIM, EMBED_DIM), jnp.float32) * 0.1
    wo_t = jax.random.normal(kwo, (EMBED_DIM, EMBED_DIM), jnp.float32) * 0.1
    bo = jax.random.normal(kbo, (1, EMBED_DIM), jnp.float32) * 0.1

    out, attn = mha_forward(values, keys, queries, mask,
                            wv_t, wk_t, wq_t, wo_t, bo, NUM_HEADS)
    out, attn = jax.block_until_ready((out, attn))

    ref_out, ref_attn = reference_mha(values, keys, queries, mask,
                                      wv_t, wk_t, wq_t, wo_t, bo, NUM_HEADS)

    assert out.shape == (BATCH, SEQ_LEN, EMBED_DIM)
    assert attn.shape == (BATCH, NUM_HEADS, SEQ_LEN, SEQ_LEN)
    # tolerance is loose only because of pl.reciprocal(approx=True) in the softmax
    # (EUP approximate reciprocal); set approx=False for bit-tighter agreement.
    assert jnp.allclose(out, ref_out, atol=1e-2, rtol=1e-2), "output mismatch vs reference"
    assert jnp.allclose(attn, ref_attn, atol=1e-2, rtol=1e-2), "attention mismatch vs reference"

    print("KERNEL_OK")
</pallas_src>

<mosaic_0001>
module attributes {stable_mosaic.version = 11 : i64} {
  func.func @mha_kernel(%arg0: memref<2x8x32xf32, #tpu.memory_space<vmem>>, %arg1: memref<2x8x32xf32, #tpu.memory_space<vmem>>, %arg2: memref<2x8x32xf32, #tpu.memory_space<vmem>>, %arg3: memref<2x8xf32, #tpu.memory_space<vmem>>, %arg4: memref<2x32x16xf32, #tpu.memory_space<vmem>>, %arg5: memref<2x32x16xf32, #tpu.memory_space<vmem>>, %arg6: memref<2x32x16xf32, #tpu.memory_space<vmem>>, %arg7: memref<2x16x32xf32, #tpu.memory_space<vmem>>, %arg8: memref<1x32xf32, #tpu.memory_space<vmem>>, %arg9: memref<16x32xf32, #tpu.memory_space<vmem>>, %arg10: memref<2x2x8x8xf32, #tpu.memory_space<vmem>>) attributes {dimension_semantics = [], scalar_prefetch = 0 : i64, scratch_operands = 0 : i64, tpu.core_type = #tpu.core_type<tc>} {
    %c0 = arith.constant 0 : index
    %c0_0 = arith.constant 0 : index
    %c0_1 = arith.constant 0 : index
    %0 = vector.load %arg2[%c0, %c0_0, %c0_1] : memref<2x8x32xf32, #tpu.memory_space<vmem>>, vector<2x8x32xf32>
    %1 = vector.shape_cast %0 : vector<2x8x32xf32> to vector<16x32xf32>
    %c0_2 = arith.constant 0 : index
    %c0_3 = arith.constant 0 : index
    %c0_4 = arith.constant 0 : index
    %2 = vector.load %arg1[%c0_2, %c0_3, %c0_4] : memref<2x8x32xf32, #tpu.memory_space<vmem>>, vector<2x8x32xf32>
    %3 = vector.shape_cast %2 : vector<2x8x32xf32> to vector<16x32xf32>
    %c0_5 = arith.constant 0 : index
    %c0_6 = arith.constant 0 : index
    %c0_7 = arith.constant 0 : index
    %4 = vector.load %arg0[%c0_5, %c0_6, %c0_7] : memref<2x8x32xf32, #tpu.memory_space<vmem>>, vector<2x8x32xf32>
    %5 = vector.shape_cast %4 : vector<2x8x32xf32> to vector<16x32xf32>
    %c0_8 = arith.constant 0 : index
    %c0_9 = arith.constant 0 : index
    %6 = vector.load %arg3[%c0_8, %c0_9] : memref<2x8xf32, #tpu.memory_space<vmem>>, vector<2x8xf32>
    %cst = arith.constant 0.000000e+00 : f32
    %7 = vector.broadcast %cst : f32 to vector<2x8xf32>
    %8 = arith.cmpf oeq, %6, %7 : vector<2x8xf32>
    %cst_10 = arith.constant -1.000000e+20 : f32
    %cst_11 = arith.constant 0.000000e+00 : f32
    %9 = vector.broadcast %cst_10 : f32 to vector<2x8xf32>
    %10 = vector.broadcast %cst_11 : f32 to vector<2x8xf32>
    %11 = arith.select %8, %9, %10 : vector<2x8xi1>, vector<2x8xf32>
    %12 = vector.shape_cast %11 : vector<2x8xf32> to vector<2x1x8xf32>
    %cst_12 = arith.constant 0.000000e+00 : f32
    %13 = vector.broadcast %cst_12 : f32 to vector<16x32xf32>
    %c0_13 = arith.constant 0 : index
    %c0_14 = arith.constant 0 : index
    %c0_15 = arith.constant 0 : index
    %14 = vector.load %arg6[%c0_13, %c0_14, %c0_15] : memref<2x32x16xf32, #tpu.memory_space<vmem>>, vector<1x32x16xf32>
    %15 = vector.shape_cast %14 : vector<1x32x16xf32> to vector<32x16xf32>
    %cst_16 = arith.constant dense<0.000000e+00> : vector<16x16xf32>
    %16 = tpu.matmul %1, %15, %cst_16 {dimension_numbers = #tpu.dot_dimension_numbers<[1], [0], [0], [1], [0, 0, 1, 1], [], []>} : vector<16x32xf32>, vector<32x16xf32>, vector<16x16xf32> -> vector<16x16xf32>
    %c0_17 = arith.constant 0 : index
    %c0_18 = arith.constant 0 : index
    %c0_19 = arith.constant 0 : index
    %17 = vector.load %arg5[%c0_17, %c0_18, %c0_19] : memref<2x32x16xf32, #tpu.memory_space<vmem>>, vector<1x32x16xf32>
    %18 = vector.shape_cast %17 : vector<1x32x16xf32> to vector<32x16xf32>
    %cst_20 = arith.constant dense<0.000000e+00> : vector<16x16xf32>
    %19 = tpu.matmul %3, %18, %cst_20 {dimension_numbers = #tpu.dot_dimension_numbers<[1], [0], [0], [1], [0, 0, 1, 1], [], []>} : vector<16x32xf32>, vector<32x16xf32>, vector<16x16xf32> -> vector<16x16xf32>
    %c0_21 = arith.constant 0 : index
    %c0_22 = arith.constant 0 : index
    %c0_23 = arith.constant 0 : index
    %20 = vector.load %arg4[%c0_21, %c0_22, %c0_23] : memref<2x32x16xf32, #tpu.memory_space<vmem>>, vector<1x32x16xf32>
    %21 = vector.shape_cast %20 : vector<1x32x16xf32> to vector<32x16xf32>
    %cst_24 = arith.constant dense<0.000000e+00> : vector<16x16xf32>
    %22 = tpu.matmul %5, %21, %cst_24 {dimension_numbers = #tpu.dot_dimension_numbers<[1], [0], [0], [1], [0, 0, 1, 1], [], []>} : vector<16x32xf32>, vector<32x16xf32>, vector<16x16xf32> -> vector<16x16xf32>
    %23 = vector.shape_cast %16 : vector<16x16xf32> to vector<2x8x16xf32>
    %24 = vector.shape_cast %19 : vector<16x16xf32> to vector<2x8x16xf32>
    %25 = vector.shape_cast %22 : vector<16x16xf32> to vector<2x8x16xf32>
    "tpu.trace_start"() <{level = 10 : i32, message = "nqd,nkd->nqk"}> : () -> ()
    %cst_25 = arith.constant dense<0.000000e+00> : vector<2x8x8xf32>
    %26 = tpu.matmul %23, %24, %cst_25 {dimension_numbers = #tpu.dot_dimension_numbers<[2], [2], [1], [1], [0, 0, 0, 1, 1, 1], [0], [0]>} : vector<2x8x16xf32>, vector<2x8x16xf32>, vector<2x8x8xf32> -> vector<2x8x8xf32>
    "tpu.trace_stop"() : () -> ()
    %cst_26 = arith.constant 0.176776692 : f32
    %27 = vector.broadcast %cst_26 : f32 to vector<2x8x8xf32>
    %28 = arith.mulf %26, %27 : vector<2x8x8xf32>
    %29 = vector.broadcast %12 : vector<2x1x8xf32> to vector<2x8x8xf32>
    %30 = arith.addf %28, %29 : vector<2x8x8xf32>
    %cst_27 = arith.constant dense<0xFF800000> : vector<2x8xf32>
    %31 = vector.multi_reduction <maximumf>, %30, %cst_27 [2] : vector<2x8x8xf32> to vector<2x8xf32>
    %32 = vector.shape_cast %31 : vector<2x8xf32> to vector<2x8x1xf32>
    %33 = vector.broadcast %32 : vector<2x8x1xf32> to vector<2x8x8xf32>
    %34 = arith.subf %30, %33 : vector<2x8x8xf32>
    %35 = math.exp %34 : vector<2x8x8xf32>
    %cst_28 = arith.constant dense<0.000000e+00> : vector<2x8xf32>
    %36 = vector.multi_reduction <add>, %35, %cst_28 [2] : vector<2x8x8xf32> to vector<2x8xf32>
    %37 = vector.shape_cast %36 : vector<2x8xf32> to vector<2x8x1xf32>
    %38 = tpu.reciprocal %37 {approx = true} : vector<2x8x1xf32> -> vector<2x8x1xf32>
    %39 = vector.broadcast %38 : vector<2x8x1xf32> to vector<2x8x8xf32>
    %40 = arith.mulf %35, %39 : vector<2x8x8xf32>
    %c0_29 = arith.constant 0 : index
    %c0_30 = arith.constant 0 : index
    %c0_31 = arith.constant 0 : index
    %c0_32 = arith.constant 0 : index
    %41 = vector.load %arg10[%c0_29, %c0_30, %c0_31, %c0_32] : memref<2x2x8x8xf32, #tpu.memory_space<vmem>>, vector<1x2x8x8xf32>
    %42 = vector.shape_cast %41 : vector<1x2x8x8xf32> to vector<2x8x8xf32>
    %43 = vector.shape_cast %40 : vector<2x8x8xf32> to vector<1x2x8x8xf32>
    tpu.vector_store %arg10[%c0_29, %c0_30, %c0_31, %c0_32], %43 {strides = array<i32>} : memref<2x2x8x8xf32, #tpu.memory_space<vmem>>, vector<1x2x8x8xf32>,
    "tpu.trace_start"() <{level = 10 : i32, message = "nqk,nkd->nqd"}> : () -> ()
    %cst_33 = arith.constant dense<0.000000e+00> : vector<2x8x16xf32>
    %44 = tpu.matmul %40, %25, %cst_33 {dimension_numbers = #tpu.dot_dimension_numbers<[2], [1], [1], [2], [0, 0, 0, 1, 1, 2], [0], [0]>} : vector<2x8x8xf32>, vector<2x8x16xf32>, vector<2x8x16xf32> -> vector<2x8x16xf32>
    "tpu.trace_stop"() : () -> ()
    %45 = vector.shape_cast %44 : vector<2x8x16xf32> to vector<16x16xf32>
    %c0_34 = arith.constant 0 : index
    %c0_35 = arith.constant 0 : index
    %c0_36 = arith.constant 0 : index
    %46 = vector.load %arg7[%c0_34, %c0_35, %c0_36] : memref<2x16x32xf32, #tpu.memory_space<vmem>>, vector<1x16x32xf32>
    %47 = vector.shape_cast %46 : vector<1x16x32xf32> to vector<16x32xf32>
    %cst_37 = arith.constant dense<0.000000e+00> : vector<16x32xf32>
    %48 = tpu.matmul %45, %47, %cst_37 {dimension_numbers = #tpu.dot_dimension_numbers<[1], [0], [0], [1], [0, 0, 1, 1], [], []>} : vector<16x16xf32>, vector<16x32xf32>, vector<16x32xf32> -> vector<16x32xf32>
    %49 = arith.addf %13, %48 : vector<16x32xf32>
    %c1 = arith.constant 1 : index
    %c0_38 = arith.constant 0 : index
    %c0_39 = arith.constant 0 : index
    %50 = vector.load %arg6[%c1, %c0_38, %c0_39] : memref<2x32x16xf32, #tpu.memory_space<vmem>>, vector<1x32x16xf32>
    %51 = vector.shape_cast %50 : vector<1x32x16xf32> to vector<32x16xf32>
    %cst_40 = arith.constant dense<0.000000e+00> : vector<16x16xf32>
    %52 = tpu.matmul %1, %51, %cst_40 {dimension_numbers = #tpu.dot_dimension_numbers<[1], [0], [0], [1], [0, 0, 1, 1], [], []>} : vector<16x32xf32>, vector<32x16xf32>, vector<16x16xf32> -> vector<16x16xf32>
    %c1_41 = arith.constant 1 : index
    %c0_42 = arith.constant 0 : index
    %c0_43 = arith.constant 0 : index
    %53 = vector.load %arg5[%c1_41, %c0_42, %c0_43] : memref<2x32x16xf32, #tpu.memory_space<vmem>>, vector<1x32x16xf32>
    %54 = vector.shape_cast %53 : vector<1x32x16xf32> to vector<32x16xf32>
    %cst_44 = arith.constant dense<0.000000e+00> : vector<16x16xf32>
    %55 = tpu.matmul %3, %54, %cst_44 {dimension_numbers = #tpu.dot_dimension_numbers<[1], [0], [0], [1], [0, 0, 1, 1], [], []>} : vector<16x32xf32>, vector<32x16xf32>, vector<16x16xf32> -> vector<16x16xf32>
    %c1_45 = arith.constant 1 : index
    %c0_46 = arith.constant 0 : index
    %c0_47 = arith.constant 0 : index
    %56 = vector.load %arg4[%c1_45, %c0_46, %c0_47] : memref<2x32x16xf32, #tpu.memory_space<vmem>>, vector<1x32x16xf32>
    %57 = vector.shape_cast %56 : vector<1x32x16xf32> to vector<32x16xf32>
    %cst_48 = arith.constant dense<0.000000e+00> : vector<16x16xf32>
    %58 = tpu.matmul %5, %57, %cst_48 {dimension_numbers = #tpu.dot_dimension_numbers<[1], [0], [0], [1], [0, 0, 1, 1], [], []>} : vector<16x32xf32>, vector<32x16xf32>, vector<16x16xf32> -> vector<16x16xf32>
    %59 = vector.shape_cast %52 : vector<16x16xf32> to vector<2x8x16xf32>
    %60 = vector.shape_cast %55 : vector<16x16xf32> to vector<2x8x16xf32>
    %61 = vector.shape_cast %58 : vector<16x16xf32> to vector<2x8x16xf32>
    "tpu.trace_start"() <{level = 10 : i32, message = "nqd,nkd->nqk"}> : () -> ()
    %cst_49 = arith.constant dense<0.000000e+00> : vector<2x8x8xf32>
    %62 = tpu.matmul %59, %60, %cst_49 {dimension_numbers = #tpu.dot_dimension_numbers<[2], [2], [1], [1], [0, 0, 0, 1, 1, 1], [0], [0]>} : vector<2x8x16xf32>, vector<2x8x16xf32>, vector<2x8x8xf32> -> vector<2x8x8xf32>
    "tpu.trace_stop"() : () -> ()
    %cst_50 = arith.constant 0.176776692 : f32
    %63 = vector.broadcast %cst_50 : f32 to vector<2x8x8xf32>
    %64 = arith.mulf %62, %63 : vector<2x8x8xf32>
    %65 = vector.broadcast %12 : vector<2x1x8xf32> to vector<2x8x8xf32>
    %66 = arith.addf %64, %65 : vector<2x8x8xf32>
    %cst_51 = arith.constant dense<0xFF800000> : vector<2x8xf32>
    %67 = vector.multi_reduction <maximumf>, %66, %cst_51 [2] : vector<2x8x8xf32> to vector<2x8xf32>
    %68 = vector.shape_cast %67 : vector<2x8xf32> to vector<2x8x1xf32>
    %69 = vector.broadcast %68 : vector<2x8x1xf32> to vector<2x8x8xf32>
    %70 = arith.subf %66, %69 : vector<2x8x8xf32>
    %71 = math.exp %70 : vector<2x8x8xf32>
    %cst_52 = arith.constant dense<0.000000e+00> : vector<2x8xf32>
    %72 = vector.multi_reduction <add>, %71, %cst_52 [2] : vector<2x8x8xf32> to vector<2x8xf32>
    %73 = vector.shape_cast %72 : vector<2x8xf32> to vector<2x8x1xf32>
    %74 = tpu.reciprocal %73 {approx = true} : vector<2x8x1xf32> -> vector<2x8x1xf32>
    %75 = vector.broadcast %74 : vector<2x8x1xf32> to vector<2x8x8xf32>
    %76 = arith.mulf %71, %75 : vector<2x8x8xf32>
    %c1_53 = arith.constant 1 : index
    %c0_54 = arith.constant 0 : index
    %c0_55 = arith.constant 0 : index
    %c0_56 = arith.constant 0 : index
    %77 = vector.load %arg10[%c1_53, %c0_54, %c0_55, %c0_56] : memref<2x2x8x8xf32, #tpu.memory_space<vmem>>, vector<1x2x8x8xf32>
    %78 = vector.shape_cast %77 : vector<1x2x8x8xf32> to vector<2x8x8xf32>
    %79 = vector.shape_cast %76 : vector<2x8x8xf32> to vector<1x2x8x8xf32>
    tpu.vector_store %arg10[%c1_53, %c0_54, %c0_55, %c0_56], %79 {strides = array<i32>} : memref<2x2x8x8xf32, #tpu.memory_space<vmem>>, vector<1x2x8x8xf32>,
    "tpu.trace_start"() <{level = 10 : i32, message = "nqk,nkd->nqd"}> : () -> ()
    %cst_57 = arith.constant dense<0.000000e+00> : vector<2x8x16xf32>
    %80 = tpu.matmul %76, %61, %cst_57 {dimension_numbers = #tpu.dot_dimension_numbers<[2], [1], [1], [2], [0, 0, 0, 1, 1, 2], [0], [0]>} : vector<2x8x8xf32>, vector<2x8x16xf32>, vector<2x8x16xf32> -> vector<2x8x16xf32>
    "tpu.trace_stop"() : () -> ()
    %81 = vector.shape_cast %80 : vector<2x8x16xf32> to vector<16x16xf32>
    %c1_58 = arith.constant 1 : index
    %c0_59 = arith.constant 0 : index
    %c0_60 = arith.constant 0 : index
    %82 = vector.load %arg7[%c1_58, %c0_59, %c0_60] : memref<2x16x32xf32, #tpu.memory_space<vmem>>, vector<1x16x32xf32>
    %83 = vector.shape_cast %82 : vector<1x16x32xf32> to vector<16x32xf32>
    %cst_61 = arith.constant dense<0.000000e+00> : vector<16x32xf32>
    %84 = tpu.matmul %81, %83, %cst_61 {dimension_numbers = #tpu.dot_dimension_numbers<[1], [0], [0], [1], [0, 0, 1, 1], [], []>} : vector<16x16xf32>, vector<16x32xf32>, vector<16x32xf32> -> vector<16x32xf32>
    %85 = arith.addf %49, %84 : vector<16x32xf32>
    %c0_62 = arith.constant 0 : index
    %c0_63 = arith.constant 0 : index
    %86 = vector.load %arg8[%c0_62, %c0_63] : memref<1x32xf32, #tpu.memory_space<vmem>>, vector<1x32xf32>
    %87 = vector.broadcast %86 : vector<1x32xf32> to vector<16x32xf32>
    %88 = arith.addf %85, %87 : vector<16x32xf32>
    %c0_64 = arith.constant 0 : index
    %c0_65 = arith.constant 0 : index
    %89 = vector.load %arg9[%c0_64, %c0_65] : memref<16x32xf32, #tpu.memory_space<vmem>>, vector<16x32xf32>
    tpu.vector_store %arg9[%c0_64, %c0_65], %88 {strides = array<i32>} : memref<16x32xf32, #tpu.memory_space<vmem>>, vector<16x32xf32>,
    return
  }
}

</mosaic_0001>

<bundles_post_ra>
// kernel: tpu_custom_call.1
= control target key start
LH: loop header
LB: loop body
LE: loop exit
PB: predicated region body
PF: predicated region fallthrough
CT: control target
= control target key end

     0   :  { %16 = vsyncpa [#allocation3], 0  ;;  %vm51_vm0 = vcmask 261120   ;;  %s961_s0 = inlined_call_operand.vmem [shape: f32[2,8,32], index: 0, kind: input, shape index: {}]   ;;  %s962_s1 = inlined_call_operand.vmem [shape: f32[2,8,32], index: 1, kind: input, shape index: {}]   ;;  %s963_s2 = inlined_call_operand.vmem [shape: f32[2,8,32], index: 2, kind: input, shape index: {}]   ;;  %s964_s3 = inlined_call_operand.vmem [shape: f32[2,8], index: 3, kind: input, shape index: {}]   ;;  %s965_s4 = inlined_call_operand.vmem [shape: f32[2,32,16], index: 4, kind: input, shape index: {}]   ;;  %s966_s5 = inlined_call_operand.vmem [shape: f32[2,32,16], index: 5, kind: input, shape index: {}]   ;;  %s967_s6 = inlined_call_operand.vmem [shape: f32[2,32,16], index: 6, kind: input, shape index: {}]   ;;  %s968_s7 = inlined_call_operand.vmem [shape: f32[2,16,32], index: 7, kind: input, shape index: {}]   ;;  %s969_s8 = inlined_call_operand.vmem [shape: f32[1,32], index: 8, kind: input, shape index: {}]   ;;  %s970_s9 = inlined_call_operand.hbm [shape: f32[16,32], index: 9, kind: output, shape index: {0}]   ;;  %s971_s10 = inlined_call_operand.hbm [shape: f32[2,2,8,8], index: 10, kind: output, shape index: {1}]  }
   0x1   :  { %v50_v0 = vld [vmem:[%s967_s6 + $0x18] sm:$0xff]  ;;  %v49_v1 = vld [vmem:[%s967_s6 + $0x10] sm:$0xff]  ;;  %v48_v2 = vld [vmem:[%s967_s6 + $0x8] sm:$0xff] }
   0x2   :  { %639 = vmatpush.msra.mxu1 %v50_v0  ;;  %70 = vmatpush.msra.mxu0 %v50_v0  ;;  %v47_v3 = vld [vmem:[%s967_s6] sm:$0xff]  ;;  %v117_v4 = vld [vmem:[%s965_s4 + $0x18] sm:$0xff]  ;;  %v795_v5 = vld [vmem:[%s963_s2 + $0x8] sm:$0xff] }
   0x3   :  { %v800_v6 = vld [vmem:[%s963_s2] sm:$0xff]  ;;  %v84_v7 = vld [vmem:[%s966_s5 + $0x18] sm:$0xff]  ;;  %136 = vmatpush.msra.mxu2 %v117_v4  ;;  %v116_v8 = vld [vmem:[%s965_s4 + $0x10] sm:$0xff] }
   0x4   :  { %640 = vmatpush.msra.mxu1 %v49_v1  ;;  %71 = vmatpush.msra.mxu0 %v49_v1 }
   0x6   :  { %641 = vmatpush.msra.mxu1 %v48_v2  ;;  %72 = vmatpush.msra.mxu0 %v48_v2 }
   0x7   :  { %17 = vsyncpa [#allocation5], 0  ;;  %v83_v9 = vld [vmem:[%s966_s5 + $0x10] sm:$0xff]  ;;  %v115_v10 = vld [vmem:[%s965_s4 + $0x8] sm:$0xff]  ;;  %137 = vmatpush.msra.mxu2 %v116_v8  ;;  %vm147_vm1 = vcmask 130048   ;;  %v717_v25 = vmov 0.0  }
   0x8   :  { %642 = vmatpush.msra.mxu1 %v47_v3  ;;  %73 = vmatpush.msra.mxu0 %v47_v3  ;;  %v82_v11 = vld [vmem:[%s966_s5 + $0x8] sm:$0xff]  ;;  %v114_v12 = vld [vmem:[%s965_s4] sm:$0xff]  ;;  %vm208_vm3 = vcmask 64512   ;;  %v618_v38 = vld [vmem:[%s966_s5 + $0x38] sm:$0xff]  ;;  %s580_s14 = sshll.u32 %s971_s10, 4  ;;  %s719_s15 = smov 128   ;;  %s581_s14 = int_to_ptr.hbm [resolvable:$true] %s580_s14 }
   0x9   :  { %598 = vmatmul.msk.f32.vlgmr.msra.gmra.mxu1 %vm51_vm0, %v795_v5  ;;  %597 = vmatmul.msk.f32.vlgmr.msra.gmra.mxu0 %vm51_vm0, %v800_v6  ;;  %v827_v13 = vld [vmem:[%s961_s0] sm:$0xff]  ;;  %v39_v16 = vld [vmem:[%s962_s1 + $0x8] sm:$0xff]  ;;  %v617_v39 = vld [vmem:[%s966_s5 + $0x30] sm:$0xff]  ;;  %s720_s16 = smov 8   ;;  %s721_s19 = smov [#allocation2]  }
   0xa   :  { %103 = vmatpush.msrb.mxu1 %v84_v7  ;;  %138 = vmatpush.msra.mxu2 %v115_v10  ;;  %v81_v14 = vld [vmem:[%s966_s5] sm:$0xff]  ;;  %v845_v17 = vld [vmem:[%s961_s0 + $0x8] sm:$0xff]  ;;  %v612_v41 = vld [vmem:[%s967_s6 + $0x38] sm:$0xff]  ;;  %s565_s20 = sshll.u32 %s721_s19, 4  ;;  %s566_s20 = int_to_ptr.vmem [resolvable:$true] %s565_s20 }
   0xb   :  { %v38_v15 = vld [vmem:[%s962_s1] sm:$0xff]  ;;  %v616_v40 = vld [vmem:[%s966_s5 + $0x28] sm:$0xff]  ;;  %v611_v42 = vld [vmem:[%s967_s6 + $0x30] sm:$0xff] }
   0xc   :  { %104 = vmatpush.msrb.mxu1 %v83_v9  ;;  %139 = vmatpush.msra.mxu2 %v114_v12  ;;  %v42_v24 = vld [vmem:[%s964_s3] sm:$0x3]  ;;  %v610_v44 = vld [vmem:[%s967_s6 + $0x28] sm:$0xff]  ;;  %v624_v4 = vld [vmem:[%s965_s4 + $0x38] sm:$0xff] }
   0xd   :  { %601 = vmatmul.msk.f32.vlgmr.msra.gmra.mxu2 %vm51_vm0, %v827_v13  ;;  %vm43_vm2 = vcmp.eq.f32.partialorder %v42_v24, 0.0  ;;  %v615_v43 = vld [vmem:[%s966_s5 + $0x20] sm:$0xff]  ;;  %v280_v1 = vld [vmem:[%s968_s7 + $0x8] sm:$0xff]  ;;  %s567_s5 = sshll.u32 %s970_s9, 4  ;;  %s568_s5 = int_to_ptr.hbm [resolvable:$true] %s567_s5 }
   0xe   :  { %105 = vmatpush.msrb.mxu1 %v82_v11  ;;  %v856_v26 = vsel %vm43_vm2, -1e+20, %v717_v25  ;;  %v609_v45 = vld [vmem:[%s967_s6 + $0x20] sm:$0xff] }
   0xf   :  { %v202_v27 = vperm.slane %v856_v26, 0  ;;  %v46_v31 = vrot.slane %v856_v26, 1  ;;  %v279_v3 = vld [vmem:[%s968_s7] sm:$0xff] }
  0x10   :  { %106 = vmatpush.msrb.mxu1 %v81_v14  ;;  %v621_v7 = vld [vmem:[%s965_s4 + $0x20] sm:$0xff] }
  0x11   :  { %599 = vmatmul.msk.f32.vlgmr.msrb.gmra.mxu1 %vm51_vm0, %v38_v15  ;;  %v863_v33 = vperm.slane %v46_v31, 0  ;;  %v633_v31 = vld [vmem:[%s968_s7 + $0x10] sm:$0xff] }
  0x12   :  { %298 = vmatpush.msra.mxu1 %v612_v41 }
  0x14   :  { %299 = vmatpush.msra.mxu1 %v611_v42 }
  0x15   :  { %602 = vmatmul.msk.f32.gmra.mxu2 %vm51_vm0, %v845_v17 }
  0x16   :  { %300 = vmatpush.msra.mxu1 %v610_v44 }
  0x18   :  { %301 = vmatpush.msra.mxu1 %v609_v45 }
  0x19   :  { %600 = vmatmul.msk.f32.gmra.mxu1 %vm51_vm0, %v39_v16 }
  0x21   :  { %613 = vmatmul.msk.f32.vlgmr.msra.gmra.mxu1 %vm51_vm0, %v800_v6  ;;  %v622_v6 = vld [vmem:[%s965_s4 + $0x28] sm:$0xff] }
  0x29   :  { %614 = vmatmul.msk.f32.gmra.mxu1 %vm51_vm0, %v795_v5  ;;  %v623_v5 = vld [vmem:[%s965_s4 + $0x30] sm:$0xff] }
  0x86   :  { %v78_v18 = vpop.f32.mrf.mxu1  ;;  %v75_v20 = vpop.f32.mrf.mxu0 }
  0x8e   :  { %v108_v19 = vpop.f32.mrf.mxu1 }
  0x8f   :  { %603 = vmatpush.xpose.msk.msrb.mxu2 %vm147_vm1, %v108_v19 }
  0x90   :  { %v141_v22 = vpop.f32.mrf.mxu2 }
  0x92   :  { %604 = vmatmul.msk.f32.vlgmr.msrb.gmra.mxu2 %vm147_vm1, %v75_v20 }
  0x93   :  { %326 = vmatpush.msra.mxu2 %v618_v38 }
  0x95   :  { %327 = vmatpush.msra.mxu2 %v617_v39 }
  0x96   :  { %v111_v21 = vpop.f32.mrf.mxu1 }
  0x97   :  { %605 = vmatpush.xpose.msk.msra.mxu3 %vm147_vm1, %v111_v21  ;;  %328 = vmatpush.msra.mxu2 %v616_v40  ;;  %v648_v40 = vld [vmem:[%s969_s8] ss:$0 sm:$0xff] }
  0x98   :  { %v144_v23 = vpop.f32.mrf.mxu2 }
  0x99   :  { %274 = vmatpush.msrb.mxu0 %v144_v23  ;;  %329 = vmatpush.msra.mxu2 %v615_v43 }
  0x9a   :  { %606 = vmatmul.msk.f32.vlgmr.msra.gmra.mxu3 %vm147_vm1, %v78_v18  ;;  %619 = vmatmul.msk.f32.vlgmr.msra.gmra.mxu2 %vm51_vm0, %v38_v15 }
  0x9b   :  { %251 = vmatpush.msrb.mxu3 %v141_v22 }
  0x9d   :  { %354 = vmatpush.msra.mxu3 %v624_v4 }
  0x9e   :  { %v303_v0 = vpop.f32.mrf.mxu1 }
  0x9f   :  { %355 = vmatpush.msra.mxu3 %v623_v5 }
  0xa1   :  { %356 = vmatpush.msra.mxu3 %v622_v6 }
  0xa2   :  { %620 = vmatmul.msk.f32.gmra.mxu2 %vm51_vm0, %v39_v16 }
  0xa3   :  { %357 = vmatpush.msra.mxu3 %v621_v7 }
  0xa6   :  { %v306_v2 = vpop.f32.mrf.mxu1 }
 0x115   :  { %v171_v28 = vpop.f32.mrf.mxu2 }
 0x116   :  { %v200_v29 = vmul.f32 0.17677669, %v171_v28 }
 0x118   :  { %v206_v30 = vadd.f32 %v202_v27, %v200_v29 }
 0x11a   :  { %v209_v32 = vsel %vm208_vm3, %v206_v30, -inf }
 0x11b   :  { %210 = vmax.xlane.f32.xlu1 %v209_v32 }
 0x11d   :  { %v197_v34 = vpop.f32.mrf.mxu3  ;;  %v331_v56 = vpop.f32.mrf.mxu2 }
 0x11e   :  { %v201_v35 = vmul.f32 0.17677669, %v197_v34  ;;  %627 = vmatpush.xpose.msk.msra.mxu0 %vm147_vm1, %v331_v56 }
 0x120   :  { %v207_v36 = vadd.f32 %v863_v33, %v201_v35 }
 0x122   :  { %v212_v37 = vsel %vm208_vm3, %v207_v36, -inf }
 0x123   :  { %213 = vmax.xlane.f32.xlu0 %v212_v37 }
 0x125   :  { %v334_v63 = vpop.f32.mrf.mxu2 }
 0x18e   :  { %v211_v46 = vpop.xlane.xlu1 %210 }
 0x18f   :  { %v215_v47 = vsub.f32 %v206_v30, %v211_v46  ;;  %v634_v30 = vld [vmem:[%s968_s7 + $0x18] sm:$0xff]  ;;  %s718_s7 = smov [#allocation4]  }
 0x190   :  { %s578_s12 = sshll.u32 %s718_s7, 4  ;;  %s579_s12 = int_to_ptr.vmem [resolvable:$true] %s578_s12 }
 0x191   :  { %v217_v48 = vmul.f32 1.442695, %v215_v47 }
 0x193   :  { %649 = vpow2.f32 %v217_v48 }
 0x196   :  { %v214_v49 = vpop.xlane.xlu0 %213 }
 0x197   :  { %v216_v50 = vsub.f32 %v207_v36, %v214_v49 }
 0x199   :  { %v650_v51 = vpop.eup %649  ;;  %v219_v52 = vmul.f32 1.442695, %v216_v50 }
 0x19a   :  { %v221_v53 = vsel %vm208_vm3, %v650_v51, 0.0 }
 0x19b   :  { %651 = vpow2.f32 %v219_v52  ;;  %222 = vadd.xlane.f32.xlu1 %v221_v53 }
 0x1a1   :  { %v652_v54 = vpop.eup %651 }
 0x1a2   :  { %v224_v55 = vsel %vm208_vm3, %v652_v54, 0.0 }
 0x1a3   :  { %225 = vadd.xlane.f32.xlu0 %v224_v55 }
 0x20e   :  { %v223_v57 = vpop.xlane.xlu1 %222 }
 0x20f   :  { %653 = vrcp.f32 %v223_v57 }
 0x215   :  { %v654_v58 = vpop.eup %653 }
 0x216   :  { %v226_v59 = vpop.xlane.xlu0 %225  ;;  %v229_v60 = vmul.f32 %v654_v58, %v650_v51 }
 0x217   :  { %655 = vrcp.f32 %v226_v59 }
 0x218   :  { %231 = vst.msk [vmem:[#allocation4] sm:$0xff] %vm208_vm3, %v229_v60  ;;  %607 = vmatmul.msk.f32.vlgmr.msrb.gmra.mxu3 %vm208_vm3, %v229_v60 }
 0x219   :  { %515 = vmatpush.msrb.mxu3 %v634_v30 }
 0x21b   :  { %516 = vmatpush.msrb.mxu3 %v633_v31 }
 0x21d   :  { %v656_v61 = vpop.eup %655 }
 0x21e   :  { %v230_v62 = vmul.f32 %v656_v61, %v652_v54 }
 0x220   :  { %232 = vst.msk [vmem:[#allocation4 + $0x8] sm:$0xff] %vm208_vm3, %v230_v62  ;;  %608 = vmatmul.msk.f32.vlgmr.msrb.gmra.mxu0 %vm208_vm3, %v230_v62  ;;  %625 = vmatmul.msk.f32.vlgmr.msra.gmra.mxu3 %vm51_vm0, %v827_v13 }
 0x221   :  { %629 = vmatpush.xpose.msk.msrb.mxu0 %vm147_vm1, %v334_v63 }
 0x228   :  { %628 = vmatmul.msk.f32.vlgmr.msra.gmra.mxu0 %vm147_vm1, %v303_v0  ;;  %626 = vmatmul.msk.f32.gmra.mxu3 %vm51_vm0, %v845_v17 }
 0x229   :  { %544 = vmatpush.msra.mxu0 %v280_v1 }
 0x22b   :  { %545 = vmatpush.msra.mxu0 %v279_v3 }
 0x230   :  { %630 = vmatmul.msk.f32.vlgmr.msrb.gmra.mxu0 %vm147_vm1, %v306_v2 }
 0x29b   :  { %v253_v8 = vpop.f32.mrf.mxu3 }
 0x29c   :  { %637 = vmatmul.msk.f32.vlgmr.msra.gmra.mxu0 %vm147_vm1, %v253_v8 }
 0x29d   :  { %v276_v9 = vpop.f32.mrf.mxu0 }
 0x2a3   :  { %v359_v20 = vpop.f32.mrf.mxu3 }
 0x2a4   :  { %638 = vmatmul.msk.f32.gmra.mxu0 %vm147_vm1, %v276_v9  ;;  %464 = vmatpush.msrb.mxu1 %v359_v20 }
 0x2a5   :  { %v388_v10 = vpop.f32.mrf.mxu0 }
 0x2a6   :  { %v417_v11 = vmul.f32 0.17677669, %v388_v10 }
 0x2a8   :  { %v419_v12 = vadd.f32 %v417_v11, %v202_v27 }
 0x2aa   :  { %v421_v14 = vsel %vm208_vm3, %v419_v12, -inf }
 0x2ab   :  { %422 = vmax.xlane.f32.xlu2 %v421_v14  ;;  %v362_v29 = vpop.f32.mrf.mxu3 }
 0x2ac   :  { %487 = vmatpush.msrb.mxu2 %v362_v29 }
 0x2ad   :  { %v414_v15 = vpop.f32.mrf.mxu0 }
 0x2ae   :  { %v418_v16 = vmul.f32 0.17677669, %v414_v15 }
 0x2b0   :  { %v420_v13 = vadd.f32 %v418_v16, %v863_v33 }
 0x2b2   :  { %v424_v18 = vsel %vm208_vm3, %v420_v13, -inf }
 0x2b3   :  { %425 = vmax.xlane.f32.xlu2 %v424_v18 }
 0x319   :  { %v547_v41 = vpop.f32.mrf.mxu0 }
 0x31e   :  { %v423_v19 = vpop.xlane.xlu2 %422 }
 0x31f   :  { %v427_v17 = vsub.f32 %v419_v12, %v423_v19 }
 0x321   :  { %v429_v21 = vmul.f32 1.442695, %v427_v17  ;;  %v550_v45 = vpop.f32.mrf.mxu0 }
 0x323   :  { %657 = vpow2.f32 %v429_v21 }
 0x326   :  { %v426_v22 = vpop.xlane.xlu2 %425 }
 0x327   :  { %v428_v23 = vsub.f32 %v420_v13, %v426_v22 }
 0x329   :  { %v658_v24 = vpop.eup %657  ;;  %v431_v25 = vmul.f32 1.442695, %v428_v23 }
 0x32a   :  { %v433_v26 = vsel %vm208_vm3, %v658_v24, 0.0 }
 0x32b   :  { %659 = vpow2.f32 %v431_v25  ;;  %434 = vadd.xlane.f32.xlu0 %v433_v26 }
 0x331   :  { %v660_v27 = vpop.eup %659 }
 0x332   :  { %v436_v28 = vsel %vm208_vm3, %v660_v27, 0.0 }
 0x333   :  { %437 = vadd.xlane.f32.xlu1 %v436_v28 }
 0x39e   :  { %v435_v32 = vpop.xlane.xlu0 %434 }
 0x39f   :  { %661 = vrcp.f32 %v435_v32 }
 0x3a5   :  { %v662_v33 = vpop.eup %661 }
 0x3a6   :  { %v441_v34 = vmul.f32 %v662_v33, %v658_v24  ;;  %v438_v35 = vpop.xlane.xlu1 %437 }
 0x3a7   :  { %663 = vrcp.f32 %v438_v35 }
 0x3a8   :  { %444 = vst.msk [vmem:[#allocation4 + $0x10] sm:$0xff] %vm208_vm3, %v441_v34  ;;  %631 = vmatmul.msk.f32.vlgmr.msrb.gmra.mxu1 %vm208_vm3, %v441_v34 }
 0x3ad   :  { %v664_v36 = vpop.eup %663 }
 0x3ae   :  { %v442_v37 = vmul.f32 %v664_v36, %v660_v27 }
 0x3b0   :  { %445 = vst.msk [vmem:[#allocation4 + $0x18] sm:$0xff] %vm208_vm3, %v442_v37  ;;  %632 = vmatmul.msk.f32.vlgmr.msrb.gmra.mxu2 %vm208_vm3, %v442_v37 }
 0x3b1   :  { %586 = dma.vmem_to_hbm [thread:$0]  %s579_s12, 512, %s581_s14, [#allocation5], %s719_s15, %s719_s15, %s720_s16  }
 0x425   :  { %v466_v38 = vpop.f32.mrf.mxu1 }
 0x426   :  { %635 = vmatmul.msk.f32.vlgmr.msrb.gmra.mxu3 %vm147_vm1, %v466_v38 }
 0x433   :  { %v489_v39 = vpop.f32.mrf.mxu2 }
 0x434   :  { %636 = vmatmul.msk.f32.gmra.mxu3 %vm147_vm1, %v489_v39 }
 0x4a9   :  { %v518_v42 = vpop.f32.mrf.mxu3 }
 0x4aa   :  { %v548_v43 = vadd.f32 %v547_v41, %v518_v42 }
 0x4ac   :  { %v557_v44 = vadd.f32 %v648_v40, %v548_v43 }
 0x4ae   :  { %559 = vst.msk [vmem:[#allocation2] sm:$0xff] %vm51_vm0, %v557_v44 }
 0x4b7   :  { %v521_v46 = vpop.f32.mrf.mxu3 }
 0x4b8   :  { %v551_v47 = vadd.f32 %v550_v45, %v521_v46 }
 0x4ba   :  { %v558_v48 = vadd.f32 %v648_v40, %v551_v47 }
 0x4bc   :  { %560 = vst.msk [vmem:[#allocation2 + $0x8] sm:$0xff] %vm51_vm0, %v558_v48 }
 0x4bd   :  { %573 = dma.vmem_to_hbm [thread:$0]  %s566_s20, 256, %s568_s5, [#allocation3], %s719_s15, %s719_s15, %s720_s16  }
 0x4be   :  { %713 = dma.done.wait [#allocation3], 256  }
 0x4bf   :  { %714 = vsyncadd [#allocation3], 4294967040 }
 0x4c0   :  { %715 = dma.done.wait [#allocation5], 512  }
 0x4c1   :  { %716 = vsyncadd [#allocation5], 4294966784 }
 0x4c2   :  { %595 = vsyncpa [#allocation3], 1 }
 0x4c3   :  { %596 = vsyncpa [#allocation5], 1 }

</bundles_post_ra>
